<compile_context>
chip_gen: v5e
topology: v5e:2x2
jax: 0.10.0
libtpu: 0.0.40
codegen_flags: <defaults>
</compile_context>

<pallas_src>
import jax
import jax.numpy as jnp
from jax.experimental import pallas as pl
from jax.experimental.pallas import tpu as pltpu


def _region_kernel(cond_ref, img_ref, wire_ref, out_ref):
    # All refs are uint8 tiles; widen in-register (VPU-light, kernel is mem-bound).
    cond = cond_ref[...].astype(jnp.int32) != 0
    img = img_ref[...].astype(jnp.int32)
    wire = wire_ref[...].astype(jnp.int32)
    # wire_synth = wire where cond else 255 (white == multiply identity)
    wire_eff = jnp.where(cond, wire, 255)
    # PIL ImageChops.multiply -> MULDIV255(a, b): t = a*b + 128; ((t>>8) + t) >> 8
    t = img * wire_eff + 128
    out_ref[...] = (((t >> 8) + t) >> 8).astype(jnp.uint8)


def _center_crop_hwc(x, out_h, out_w):
    # glue equivalent of transforms.CenterCrop (image must be >= crop size)
    H, W = x.shape[0], x.shape[1]
    assert H >= out_h and W >= out_w, "image smaller than crop size"
    top = (H - out_h) // 2
    left = (W - out_w) // 2
    return x[top:top + out_h, left:left + out_w]


def region_synthetic_pattern(img_hwc_u8, wire_hwc_u8, seg_mask, *, inverse=False):
    """img_hwc_u8: (H, W, C) uint8; wire_hwc_u8: (Hc, Wc, C) uint8;
    seg_mask: (Hc, Wc) integer mask.  Returns (Hc, Wc, C) uint8."""
    Hc, Wc = seg_mask.shape
    C = img_hwc_u8.shape[-1]

    img_c = _center_crop_hwc(img_hwc_u8, Hc, Wc).astype(jnp.uint8)
    wire_u8 = wire_hwc_u8.astype(jnp.uint8)

    # Per-pixel condition (exact module semantics), broadcast along channels.
    # One cheap fused XLA pass producing H*W*C uint8 flags.
    cond = (seg_mask == 0) if inverse else (seg_mask > 0)
    cond_hwc = jnp.broadcast_to(cond[:, :, None], (Hc, Wc, C)).astype(jnp.uint8)

    total = Hc * Wc * C
    if total % 128 == 0:
        rows = total // 128
        shape2d = (rows, 128)          # lane-dense: unmasked 128-wide stores
    else:
        rows = Hc
        shape2d = (Hc, Wc * C)         # fallback: full-array block, still HWC

    # Free contiguous reshapes (no transpose, no data movement in HBM).
    img2d = img_c.reshape(shape2d)
    wire2d = wire_u8.reshape(shape2d)
    cond2d = cond_hwc.reshape(shape2d)

    # 2-way parallel row split when it stays sublane-aligned -> balances the
    # two TensorCores on v7x; harmless on single-TC v5e/v6e.
    nsplit = 2 if (shape2d[1] == 128 and shape2d[0] % 16 == 0) else 1
    block = (shape2d[0] // nsplit, shape2d[1])

    out2d = pl.pallas_call(
        _region_kernel,
        out_shape=jax.ShapeDtypeStruct(shape2d, jnp.uint8),
        grid=(nsplit,),
        in_specs=[
            pl.BlockSpec(block, lambda i: (i, 0)),   # cond flags
            pl.BlockSpec(block, lambda i: (i, 0)),   # img
            pl.BlockSpec(block, lambda i: (i, 0)),   # wire
        ],
        out_specs=pl.BlockSpec(block, lambda i: (i, 0)),
        compiler_params=pltpu.CompilerParams(
            dimension_semantics=("parallel",)),
    )(cond2d, img2d, wire2d)

    # back to the module's HWC uint8 output convention (free reshape)
    return out2d.reshape(Hc, Wc, C)


def _reference(img_hwc_u8, wire_hwc_u8, seg_mask, inverse):
    # pure-jnp reference of the PIL semantics, for verification
    Hc, Wc = seg_mask.shape
    img_c = _center_crop_hwc(img_hwc_u8, Hc, Wc).astype(jnp.int32)
    wire_i = wire_hwc_u8.astype(jnp.int32)
    cond = (seg_mask == 0) if inverse else (seg_mask > 0)
    wire_eff = jnp.where(cond[:, :, None], wire_i, 255)
    t = img_c * wire_eff + 128
    return (((t >> 8) + t) >> 8).astype(jnp.uint8)


if __name__ == "__main__":
    key = jax.random.PRNGKey(0)
    k_img, k_wire, k_mask = jax.random.split(key, 3)

    # small shapes standing in for the 224 center-crop; image bigger than mask
    # so the center crop is exercised.
    H_img, W_img = 20, 20
    Hc, Wc, C = 16, 16, 3

    img = jax.random.randint(k_img, (H_img, W_img, C), 0, 256,
                             dtype=jnp.int32).astype(jnp.uint8)
    # deterministic synthetic "wire fence" pattern (WireFenceImg.wire_img stand-in)
    wire = jax.random.randint(k_wire, (Hc, Wc, C), 0, 256,
                              dtype=jnp.int32).astype(jnp.uint8)
    seg_mask = (jax.random.uniform(k_mask, (Hc, Wc)) > 0.5).astype(jnp.int32)

    out = region_synthetic_pattern(img, wire, seg_mask, inverse=False)
    out_inv = region_synthetic_pattern(img, wire, seg_mask, inverse=True)
    jax.block_until_ready(out)
    jax.block_until_ready(out_inv)

    ref = _reference(img, wire, seg_mask, False)
    ref_inv = _reference(img, wire, seg_mask, True)

    assert out.shape == (Hc, Wc, C) and out.dtype == jnp.uint8
    assert bool(jnp.all(out == ref))
    assert bool(jnp.all(out_inv == ref_inv))
    print("KERNEL_OK")
</pallas_src>

<mosaic_0001>
module attributes {stable_mosaic.version = 11 : i64} {
  func.func @_region_kernel(%arg0: i32, %arg1: memref<6x128xi8, #tpu.memory_space<vmem>>, %arg2: memref<6x128xi8, #tpu.memory_space<vmem>>, %arg3: memref<6x128xi8, #tpu.memory_space<vmem>>, %arg4: memref<6x128xi8, #tpu.memory_space<vmem>>) attributes {dimension_semantics = [#tpu.dimension_semantics<parallel>], iteration_bounds = array<i64: 1>, scalar_prefetch = 0 : i64, scratch_operands = 0 : i64, tpu.core_type = #tpu.core_type<tc>, window_params = [{transform_indices = @transform_0, window_bounds = array<i64: 6, 128>}, {transform_indices = @transform_1, window_bounds = array<i64: 6, 128>}, {transform_indices = @transform_2, window_bounds = array<i64: 6, 128>}, {transform_indices = @transform_3, window_bounds = array<i64: 6, 128>}]} {
    %c0 = arith.constant 0 : index
    %c0_0 = arith.constant 0 : index
    %0 = vector.load %arg1[%c0, %c0_0] : memref<6x128xi8, #tpu.memory_space<vmem>>, vector<6x128xi8>
    %1 = arith.extui %0 : vector<6x128xi8> to vector<6x128xi32>
    %c0_i32 = arith.constant 0 : i32
    %2 = vector.broadcast %c0_i32 : i32 to vector<6x128xi32>
    %3 = arith.cmpi ne, %1, %2 : vector<6x128xi32>
    %c0_1 = arith.constant 0 : index
    %c0_2 = arith.constant 0 : index
    %4 = vector.load %arg2[%c0_1, %c0_2] : memref<6x128xi8, #tpu.memory_space<vmem>>, vector<6x128xi8>
    %5 = arith.extui %4 : vector<6x128xi8> to vector<6x128xi32>
    %c0_3 = arith.constant 0 : index
    %c0_4 = arith.constant 0 : index
    %6 = vector.load %arg3[%c0_3, %c0_4] : memref<6x128xi8, #tpu.memory_space<vmem>>, vector<6x128xi8>
    %7 = arith.extui %6 : vector<6x128xi8> to vector<6x128xi32>
    %c255_i32 = arith.constant 255 : i32
    %8 = vector.broadcast %c255_i32 : i32 to vector<6x128xi32>
    %9 = arith.select %3, %7, %8 : vector<6x128xi1>, vector<6x128xi32>
    %10 = arith.muli %5, %9 : vector<6x128xi32>
    %c128_i32 = arith.constant 128 : i32
    %11 = vector.broadcast %c128_i32 : i32 to vector<6x128xi32>
    %12 = arith.addi %10, %11 : vector<6x128xi32>
    %c8_i32 = arith.constant 8 : i32
    %13 = vector.broadcast %c8_i32 : i32 to vector<6x128xi32>
    %14 = arith.shrsi %12, %13 : vector<6x128xi32>
    %15 = arith.addi %14, %12 : vector<6x128xi32>
    %c8_i32_5 = arith.constant 8 : i32
    %16 = vector.broadcast %c8_i32_5 : i32 to vector<6x128xi32>
    %17 = arith.shrsi %15, %16 : vector<6x128xi32>
    %18 = arith.trunci %17 : vector<6x128xi32> to vector<6x128xi8>
    %c0_6 = arith.constant 0 : index
    %c0_7 = arith.constant 0 : index
    %19 = vector.load %arg4[%c0_6, %c0_7] : memref<6x128xi8, #tpu.memory_space<vmem>>, vector<6x128xi8>
    tpu.vector_store %arg4[%c0_6, %c0_7], %18 {strides = array<i32>} : memref<6x128xi8, #tpu.memory_space<vmem>>, vector<6x128xi8>,
    return
  }
  func.func @transform_0(%arg0: i32) -> (i32, i32) {
    %c0_i32 = arith.constant 0 : i32
    %c0_i32_0 = arith.constant 0 : i32
    return %arg0, %c0_i32 : i32, i32
  }
  func.func @transform_1(%arg0: i32) -> (i32, i32) {
    %c0_i32 = arith.constant 0 : i32
    %c0_i32_0 = arith.constant 0 : i32
    return %arg0, %c0_i32 : i32, i32
  }
  func.func @transform_2(%arg0: i32) -> (i32, i32) {
    %c0_i32 = arith.constant 0 : i32
    %c0_i32_0 = arith.constant 0 : i32
    return %arg0, %c0_i32 : i32, i32
  }
  func.func @transform_3(%arg0: i32) -> (i32, i32) {
    %c0_i32 = arith.constant 0 : i32
    %c0_i32_0 = arith.constant 0 : i32
    return %arg0, %c0_i32 : i32, i32
  }
}

</mosaic_0001>

<bundles_post_ra>
// kernel: tpu_custom_call.1
= control target key start
LH: loop header
LB: loop body
LE: loop exit
PB: predicated region body
PF: predicated region fallthrough
CT: control target
= control target key end

     0   :  { %8 = vsyncpa [#allocation3], 0  ;;  %s240_s0 = inlined_call_operand.hbm [shape: u8[6,128], index: 0, kind: input, shape index: {}]   ;;  %s241_s1 = inlined_call_operand.hbm [shape: u8[6,128], index: 1, kind: input, shape index: {}]   ;;  %s242_s2 = inlined_call_operand.hbm [shape: u8[6,128], index: 2, kind: input, shape index: {}]   ;;  %s243_s3 = inlined_call_operand.hbm [shape: u8[6,128], index: 3, kind: output, shape index: {}]  }
   0x1   :  { %9 = vsyncpa [#allocation6], 0  ;;  %s27_s14 = sshll.u32 %s241_s1, 4  ;;  %s28_s14 = int_to_ptr.hbm [resolvable:$true] %s27_s14 }
   0x2   :  { %10 = vsyncpa [#allocation4], 0  ;;  %s204_s15 = smov [#allocation5]   ;;  %s16_s19 = sshll.u32 %s240_s0, 4  ;;  %s17_s19 = int_to_ptr.hbm [resolvable:$true] %s16_s19 }
   0x3   :  { %s29_s16 = sshll.u32 %s204_s15, 4  ;;  %s205_s20 = smov [#allocation2]   ;;  %s30_s16 = int_to_ptr.vmem [resolvable:$true] %s29_s16 }
   0x4   :  { %32 = dma.hbm_to_vmem [thread:$0]  %s28_s14, 32, %s30_s16, [#allocation6]  }
   0x5   :  { %s18_s21 = sshll.u32 %s205_s20, 4  ;;  %s38_s24 = sshll.u32 %s242_s2, 4  ;;  %s19_s21 = int_to_ptr.vmem [resolvable:$true] %s18_s21  ;;  %s39_s24 = int_to_ptr.hbm [resolvable:$true] %s38_s24 }
   0x6   :  { %21 = dma.hbm_to_vmem [thread:$0]  %s17_s19, 32, %s19_s21, [#allocation3]  }
   0x7   :  { %s206_s1 = smov [#allocation7]  }
   0x8   :  { %s40_s25 = sshll.u32 %s206_s1, 4  ;;  %s41_s25 = int_to_ptr.vmem [resolvable:$true] %s40_s25 }
   0x9   :  { %43 = dma.hbm_to_vmem [thread:$0]  %s39_s24, 32, %s41_s25, [#allocation6]  }
   0xa   :  { %198 = dma.done.wait [#allocation3], 32  }
   0xb   :  { %199 = vsyncadd [#allocation3], 4294967264 }
   0xc   :  { %200 = dma.done.wait [#allocation6], 64  }
   0xd   :  { %201 = vsyncadd [#allocation6], 4294967232  ;;  %v56_v0 = vld [vmem:[#allocation2] sm:$0x3]  ;;  %v60_v1 = vld [vmem:[#allocation5] sm:$0x3] }
   0xe   :  { %v63_v2 = vld [vmem:[#allocation7] sm:$0x3]  ;;  %v57_v3 = vunpack.c.0.s8 %v56_v0  ;;  %v61_v4 = vunpack.c.0.s8 %v60_v1  ;;  %vm74_vm1 = vcmask 1041408   ;;  %vm75_vm2 = vsmask.f32 1280  ;;  %s207_s0 = smov [#allocation8]  }
   0xf   :  { %v64_v5 = vunpack.c.0.s8 %v63_v2  ;;  %s85_s2 = sshll.u32 %s207_s0, 4  ;;  %s87_s28 = sshll.u32 %s243_s3, 4  ;;  %vm76_vm3 = vmand %vm74_vm1, %vm75_vm2  ;;  %v77_v16 = vld [vmem:[#allocation8] sm:$0x3]  ;;  %s86_s2 = int_to_ptr.vmem [resolvable:$true] %s85_s2  ;;  %s88_s28 = int_to_ptr.hbm [resolvable:$true] %s87_s28 }
  0x10   :  { %v58_v6 = vand.u32 255, %v57_v3  ;;  %v62_v7 = vand.u32 255, %v61_v4 }
  0x11   :  { %v65_v8 = vand.u32 255, %v64_v5 }
  0x12   :  { %vm59_vm0 = vcmp.ne.s32.totalorder %v58_v6, 0 }
  0x13   :  { %v66_v9 = vsel %vm59_vm0, %v65_v8, 255 }
  0x14   :  { %v67_v10 = vmul.u32 %v66_v9, %v62_v7 }
  0x16   :  { %v68_v11 = vadd.s32 128, %v67_v10 }
  0x18   :  { %v69_v12 = vshra.s32 %v68_v11, 8 }
  0x1a   :  { %v70_v13 = vadd.s32 %v69_v12, %v68_v11 }
  0x1c   :  { %v71_v14 = vshra.s32 %v70_v13, 8 }
  0x1e   :  { %v72_v15 = vpack.c.b16 %v71_v14, %v71_v14 }
  0x20   :  { %v73_v17 = vpack.c.b8 %v72_v15, %v72_v15 }
  0x22   :  { %v78_v18 = vsel %vm76_vm3, %v73_v17, %v77_v16 }
  0x23   :  { %79 = vst [vmem:[#allocation8] sm:$0x3] %v78_v18 }
  0x24   :  { %90 = dma.vmem_to_hbm [thread:$0]  %s86_s2, 32, %s88_s28, [#allocation4]  }
  0x25   :  { %202 = dma.done.wait [#allocation4], 32  }
  0x26   :  { %203 = vsyncadd [#allocation4], 4294967264 }
  0x27   :  { %95 = vsyncpa [#allocation3], 1 }
  0x28   :  { %96 = vsyncpa [#allocation6], 1 }
  0x29   :  { %97 = vsyncpa [#allocation4], 1 }

</bundles_post_ra>
